<compile_context>
chip_gen: v6e
topology: v6e:2x2x1
jax: 0.10.0
libtpu: 0.0.40
codegen_flags: <defaults>
</compile_context>

<pallas_src>
import math
import jax
import jax.numpy as jnp
from jax.experimental import pallas as pl
from jax.experimental.pallas import tpu as pltpu

GN_EPS = 1e-5


# --------------------------------------------------------------------------------------
# Pass 1: GroupNorm statistics  ->  per-channel scale = gamma/std, shift = beta - mean*scale
# --------------------------------------------------------------------------------------
def _gn_stats_kernel(x_ref, a_ref, gamma_ref, beta_ref,
                     scale_ref, shift_ref, s1_ref, s2_ref):
    si = pl.program_id(1)

    @pl.when(si == 0)
    def _():
        s1_ref[...] = jnp.zeros_like(s1_ref)
        s2_ref[...] = jnp.zeros_like(s2_ref)

    x = x_ref[0]                                           # (ts, C) f32
    s1_ref[...] += jnp.sum(x, axis=0, keepdims=True)       # per-channel sum
    s2_ref[...] += jnp.sum(x * x, axis=0, keepdims=True)   # per-channel sum of squares

    @pl.when(si == pl.num_programs(1) - 1)
    def _():
        a = a_ref[...]                                     # (C, C) group-averaging matrix
        mean_c = jnp.dot(s1_ref[...], a, preferred_element_type=jnp.float32)  # (1, C)
        ex2_c = jnp.dot(s2_ref[...], a, preferred_element_type=jnp.float32)   # (1, C)
        var_c = jnp.maximum(ex2_c - mean_c * mean_c, 0.0)  # clamp tiny negative variance
        sc = jax.lax.rsqrt(var_c + GN_EPS) * gamma_ref[...]
        scale_ref[0] = sc
        shift_ref[0] = beta_ref[...] - mean_c * sc


# --------------------------------------------------------------------------------------
# Pass 2: normalize + K / V' 1x1 projections (bf16 outputs; Wp already folded into Wv)
# --------------------------------------------------------------------------------------
def _kv_kernel(x_ref, scale_ref, shift_ref,
               wk_ref, bk_ref, wv_ref, bv_ref,
               k_ref, v_ref):
    x = x_ref[0]                                                    # (tp, C) f32
    h = (x * scale_ref[0] + shift_ref[0]).astype(jnp.bfloat16)      # GroupNorm + affine
    k = jnp.dot(h, wk_ref[...], preferred_element_type=jnp.float32) + bk_ref[...]
    v = jnp.dot(h, wv_ref[...], preferred_element_type=jnp.float32) + bv_ref[...]
    k_ref[0] = k.astype(jnp.bfloat16)
    v_ref[0] = v.astype(jnp.bfloat16)                               # v' = v @ Wp (folded)


# --------------------------------------------------------------------------------------
# Pass 3: flash attention (online softmax over KV tiles); Q computed in-kernel from the
#         residual x tile; output = x + attn + bp (proj matmul already folded into V').
# --------------------------------------------------------------------------------------
def _flash_attn_kernel(x_ref, scale_ref, shift_ref, wq_ref, bq_ref,
                       k_ref, v_ref, bp_ref, o_ref,
                       q_sc, m_sc, l_sc, acc_sc):
    kj = pl.program_id(2)

    @pl.when(kj == 0)
    def _():
        # q tile: recompute GroupNorm on the (already resident) residual x tile and
        # project.  1/sqrt(C) is pre-folded into wq/bq.  Cached in VMEM across KV tiles.
        h = (x_ref[0] * scale_ref[0] + shift_ref[0]).astype(jnp.bfloat16)
        q = jnp.dot(h, wq_ref[...], preferred_element_type=jnp.float32) + bq_ref[...]
        q_sc[...] = q.astype(jnp.bfloat16)
        m_sc[...] = jnp.full_like(m_sc, -jnp.inf)
        l_sc[...] = jnp.zeros_like(l_sc)
        acc_sc[...] = jnp.zeros_like(acc_sc)

    # contraction on dim 1 of both operands -> no explicit k transpose
    s = jax.lax.dot_general(q_sc[...], k_ref[0], (((1,), (1,)), ((), ())),
                            preferred_element_type=jnp.float32)      # (tq, tk) f32

    m_prev = m_sc[...]
    m_new = jnp.maximum(m_prev, jnp.max(s, axis=-1, keepdims=True))
    alpha = jnp.exp(m_prev - m_new)
    p = jnp.exp(s - m_new)
    l_sc[...] = alpha * l_sc[...] + jnp.sum(p, axis=-1, keepdims=True)
    acc_sc[...] = alpha * acc_sc[...] + jnp.dot(
        p.astype(jnp.bfloat16), v_ref[0], preferred_element_type=jnp.float32)
    m_sc[...] = m_new

    @pl.when(kj == pl.num_programs(2) - 1)
    def _():
        # normalize once per query tile; approx reciprocal -> EUP slot
        attn = acc_sc[...] * pl.reciprocal(l_sc[...], approx=True)   # (tq, C) f32
        o_ref[0] = x_ref[0] + attn + bp_ref[...]                     # residual + proj bias


# --------------------------------------------------------------------------------------
# Wrapper
# --------------------------------------------------------------------------------------
def _pick_tile(n, pref):
    """Largest 'nice' tile <= pref that divides n (falls back to full n)."""
    for t in (pref, 512, 256, 128, 64, 32, 16, 8):
        if t <= n and n % t == 0:
            return t
    return n


def attn_block_pallas(x_nchw, params, *, tq=256, tk=256, ts=512, tp=256):
    """x_nchw: (B, C, H, W) float32.  Returns (B, C, H, W) float32."""
    B, C, H, W = x_nchw.shape
    HW = H * W
    G = 32
    assert C % G == 0

    tq = _pick_tile(HW, tq)
    tk = _pick_tile(HW, tk)
    ts = _pick_tile(HW, ts)
    tp = _pick_tile(HW, tp)

    # NCHW -> (B, HW, C)
    x = jnp.transpose(x_nchw, (0, 2, 3, 1)).reshape(B, HW, C).astype(jnp.float32)

    gamma = params["gamma"].reshape(1, C).astype(jnp.float32)
    beta = params["beta"].reshape(1, C).astype(jnp.float32)

    # group-averaging matrix: A[i, j] = 1/(HW*cpg) if group(i)==group(j) else 0
    cpg = C // G
    group_id = jnp.arange(C) // cpg
    a_mat = (group_id[:, None] == group_id[None, :]).astype(jnp.float32) / float(HW * cpg)

    def w_mat(name):  # torch conv weight (out, in, 1, 1) -> (in, out) f32
        w = params[name]
        return jnp.transpose(w.reshape(w.shape[0], w.shape[1]), (1, 0)).astype(jnp.float32)

    inv_sqrt_c = float(C) ** -0.5
    wq = (w_mat("wq") * inv_sqrt_c).astype(jnp.bfloat16)           # fold 1/sqrt(C)
    bq = params["bq"].reshape(1, C).astype(jnp.float32) * inv_sqrt_c
    wk = w_mat("wk").astype(jnp.bfloat16)
    bk = params["bk"].reshape(1, C).astype(jnp.float32)
    # fold output projection into V:  v' = h @ (Wv Wp) + bv Wp  ;  out = x + P v' + bp
    wp_f = w_mat("wp")
    wv = jnp.dot(w_mat("wv"), wp_f).astype(jnp.bfloat16)
    bv = jnp.dot(params["bv"].reshape(1, C).astype(jnp.float32), wp_f)
    bp = params["bp"].reshape(1, C).astype(jnp.float32)

    cc_spec = pl.BlockSpec((C, C), lambda *idx: (0, 0))
    row_spec = pl.BlockSpec((1, C), lambda *idx: (0, 0))

    # ---- pass 1: GroupNorm stats -> per-batch (1, C) scale/shift -----------------------
    n_s = HW // ts
    scale, shift = pl.pallas_call(
        _gn_stats_kernel,
        out_shape=(jax.ShapeDtypeStruct((B, 1, C), jnp.float32),
                   jax.ShapeDtypeStruct((B, 1, C), jnp.float32)),
        grid_spec=pltpu.PrefetchScalarGridSpec(
            num_scalar_prefetch=0,
            grid=(B, n_s),
            in_specs=[
                pl.BlockSpec((1, ts, C), lambda b, s: (b, s, 0)),   # x tile
                cc_spec,                                            # group-average matrix
                row_spec,                                           # gamma
                row_spec,                                           # beta
            ],
            out_specs=(pl.BlockSpec((1, 1, C), lambda b, s: (b, 0, 0)),
                       pl.BlockSpec((1, 1, C), lambda b, s: (b, 0, 0))),
            scratch_shapes=[pltpu.VMEM((1, C), jnp.float32),
                            pltpu.VMEM((1, C), jnp.float32)],
        ),
        compiler_params=pltpu.CompilerParams(
            dimension_semantics=("parallel", "arbitrary")),
    )(x, a_mat, gamma, beta)

    # ---- pass 2: normalize + K / V' projections (bf16) ---------------------------------
    n_p = HW // tp
    stat_spec = pl.BlockSpec((1, 1, C), lambda b, t: (b, 0, 0))
    k, v = pl.pallas_call(
        _kv_kernel,
        out_shape=tuple(jax.ShapeDtypeStruct((B, HW, C), jnp.bfloat16) for _ in range(2)),
        grid_spec=pltpu.PrefetchScalarGridSpec(
            num_scalar_prefetch=0,
            grid=(B, n_p),
            in_specs=[
                pl.BlockSpec((1, tp, C), lambda b, t: (b, t, 0)),   # x tile
                stat_spec, stat_spec,                               # scale, shift
                cc_spec, row_spec,                                  # wk, bk
                cc_spec, row_spec,                                  # wv', bv'
            ],
            out_specs=tuple(pl.BlockSpec((1, tp, C), lambda b, t: (b, t, 0))
                            for _ in range(2)),
        ),
        compiler_params=pltpu.CompilerParams(
            dimension_semantics=("parallel", "parallel")),
    )(x, scale, shift, wk, bk, wv, bv)

    # ---- pass 3: flash attention (Q computed in-kernel) + bias + residual --------------
    nq, nk = HW // tq, HW // tk
    attn_stat_spec = pl.BlockSpec((1, 1, C), lambda b, i, j: (b, 0, 0))
    out = pl.pallas_call(
        _flash_attn_kernel,
        out_shape=jax.ShapeDtypeStruct((B, HW, C), jnp.float32),
        grid_spec=pltpu.PrefetchScalarGridSpec(
            num_scalar_prefetch=0,
            grid=(B, nq, nk),
            in_specs=[
                pl.BlockSpec((1, tq, C), lambda b, i, j: (b, i, 0)),   # x (residual + q src)
                attn_stat_spec, attn_stat_spec,                        # scale, shift
                cc_spec, row_spec,                                     # wq, bq (pre-scaled)
                pl.BlockSpec((1, tk, C), lambda b, i, j: (b, j, 0)),   # k tile
                pl.BlockSpec((1, tk, C), lambda b, i, j: (b, j, 0)),   # v' tile
                row_spec,                                              # bp
            ],
            out_specs=pl.BlockSpec((1, tq, C), lambda b, i, j: (b, i, 0)),
            scratch_shapes=[pltpu.VMEM((tq, C), jnp.bfloat16),         # cached q tile
                            pltpu.VMEM((tq, 1), jnp.float32),          # running max
                            pltpu.VMEM((tq, 1), jnp.float32),          # running sum
                            pltpu.VMEM((tq, C), jnp.float32)],         # output accumulator
        ),
        compiler_params=pltpu.CompilerParams(
            dimension_semantics=("parallel", "parallel", "arbitrary"),
            vmem_limit_bytes=48 * 1024 * 1024),
    )(x, scale, shift, wq, bq, k, v, bp)

    # (B, HW, C) -> NCHW
    return jnp.transpose(out.reshape(B, H, W, C), (0, 3, 1, 2))


# --------------------------------------------------------------------------------------
# Parameters & pure-JAX reference (for verification)
# --------------------------------------------------------------------------------------
def make_params(key, C):
    """Deterministic param init matching AttnBlock.initialize()."""
    def xavier_uniform(k, shape, gain=1.0):
        fan_out, fan_in = shape[0], shape[1]
        bound = gain * math.sqrt(6.0 / (fan_in + fan_out))
        return jax.random.uniform(k, shape, jnp.float32, -bound, bound)

    k1, k2, k3, k4 = jax.random.split(key, 4)
    return {
        "gamma": jnp.ones((C,), jnp.float32),
        "beta": jnp.zeros((C,), jnp.float32),
        "wq": xavier_uniform(k1, (C, C, 1, 1)),
        "bq": jnp.zeros((C,), jnp.float32),
        "wk": xavier_uniform(k2, (C, C, 1, 1)),
        "bk": jnp.zeros((C,), jnp.float32),
        "wv": xavier_uniform(k3, (C, C, 1, 1)),
        "bv": jnp.zeros((C,), jnp.float32),
        "wp": xavier_uniform(k4, (C, C, 1, 1), gain=1e-5),  # proj re-init with gain 1e-5
        "bp": jnp.zeros((C,), jnp.float32),
    }


def attn_block_ref(x, params):
    """Pure-JAX (f32) reference of the PyTorch forward."""
    B, C, H, W = x.shape
    G = 32
    xg = x.reshape(B, G, C // G, H, W)
    mean = jnp.mean(xg, axis=(2, 3, 4), keepdims=True)
    var = jnp.mean((xg - mean) ** 2, axis=(2, 3, 4), keepdims=True)
    h = ((xg - mean) / jnp.sqrt(var + GN_EPS)).reshape(B, C, H, W)
    h = h * params["gamma"][None, :, None, None] + params["beta"][None, :, None, None]

    def conv1x1(t, w, b):
        return jnp.einsum("bchw,oc->bohw", t, w.reshape(C, C)) + b[None, :, None, None]

    q = conv1x1(h, params["wq"], params["bq"])
    k = conv1x1(h, params["wk"], params["bk"])
    v = conv1x1(h, params["wv"], params["bv"])
    q = jnp.transpose(q, (0, 2, 3, 1)).reshape(B, H * W, C)
    k = k.reshape(B, C, H * W)
    w = jnp.einsum("bqc,bck->bqk", q, k) * (C ** -0.5)
    w = jax.nn.softmax(w, axis=-1)
    v = jnp.transpose(v, (0, 2, 3, 1)).reshape(B, H * W, C)
    h = jnp.einsum("bqk,bkc->bqc", w, v)
    h = jnp.transpose(h.reshape(B, H, W, C), (0, 3, 1, 2))
    h = conv1x1(h, params["wp"], params["bp"])
    return x + h


if __name__ == "__main__":
    # GroupNorm(32, C) requires C % 32 == 0; HW=256 keeps the attention matrix tiny.
    B, C, H, W = 2, 64, 16, 16
    key = jax.random.PRNGKey(0)
    kx, kp = jax.random.split(key)
    x = jax.random.normal(kx, (B, C, H, W), jnp.float32)
    params = make_params(kp, C)

    out = jax.block_until_ready(attn_block_pallas(x, params))
    ref = jax.block_until_ready(attn_block_ref(x, params))

    assert out.shape == (B, C, H, W)
    # full output (residual dominates because proj gain = 1e-5)
    assert bool(jnp.allclose(out, ref, atol=1e-3, rtol=1e-3))
    # attention branch itself (out - x), relative to its own scale (bf16-path tolerance)
    dk = out - x
    dr = ref - x
    err = float(jnp.max(jnp.abs(dk - dr)))
    mag = float(jnp.max(jnp.abs(dr)))
    assert err <= 0.1 * mag + 1e-7, (err, mag)
    print("KERNEL_OK")
</pallas_src>

<mosaic_0001>
module attributes {stable_mosaic.version = 11 : i64} {
  func.func @_gn_stats_kernel(%arg0: i32, %arg1: i32, %arg2: memref<1x256x64xf32, #tpu.memory_space<vmem>>, %arg3: memref<64x64xf32, #tpu.memory_space<vmem>>, %arg4: memref<1x64xf32, #tpu.memory_space<vmem>>, %arg5: memref<1x64xf32, #tpu.memory_space<vmem>>, %arg6: memref<1x1x64xf32, #tpu.memory_space<vmem>>, %arg7: memref<1x1x64xf32, #tpu.memory_space<vmem>>, %arg8: memref<1x64xf32, #tpu.memory_space<vmem>>, %arg9: memref<1x64xf32, #tpu.memory_space<vmem>>) attributes {dimension_semantics = [#tpu.dimension_semantics<parallel>, #tpu.dimension_semantics<arbitrary>], iteration_bounds = array<i64: 2, 1>, scalar_prefetch = 0 : i64, scratch_operands = 2 : i64, tpu.core_type = #tpu.core_type<tc>, window_params = [{transform_indices = @transform_0, window_bounds = array<i64: 1, 256, 64>}, {pipeline_mode = #tpu.pipeline_mode<synchronous>, transform_indices = @transform_1, window_bounds = array<i64: 64, 64>}, {pipeline_mode = #tpu.pipeline_mode<synchronous>, transform_indices = @transform_2, window_bounds = array<i64: 1, 64>}, {pipeline_mode = #tpu.pipeline_mode<synchronous>, transform_indices = @transform_3, window_bounds = array<i64: 1, 64>}, {transform_indices = @transform_4, window_bounds = array<i64: 1, 1, 64>}, {transform_indices = @transform_5, window_bounds = array<i64: 1, 1, 64>}]} {
    %c0_i32 = arith.constant 0 : i32
    %0 = arith.cmpi eq, %arg1, %c0_i32 : i32
    %1 = arith.extui %0 : i1 to i32
    %c0_i32_0 = arith.constant 0 : i32
    %2 = arith.cmpi ne, %1, %c0_i32_0 : i32
    scf.if %2 {
      %cst_14 = arith.constant 0.000000e+00 : f32
      %19 = vector.broadcast %cst_14 : f32 to vector<1x64xf32>
      %c0_15 = arith.constant 0 : index
      %c0_16 = arith.constant 0 : index
      %20 = vector.load %arg8[%c0_15, %c0_16] : memref<1x64xf32, #tpu.memory_space<vmem>>, vector<1x64xf32>
      tpu.vector_store %arg8[%c0_15, %c0_16], %19 {strides = array<i32>} : memref<1x64xf32, #tpu.memory_space<vmem>>, vector<1x64xf32>,
      %cst_17 = arith.constant 0.000000e+00 : f32
      %21 = vector.broadcast %cst_17 : f32 to vector<1x64xf32>
      %c0_18 = arith.constant 0 : index
      %c0_19 = arith.constant 0 : index
      %22 = vector.load %arg9[%c0_18, %c0_19] : memref<1x64xf32, #tpu.memory_space<vmem>>, vector<1x64xf32>
      tpu.vector_store %arg9[%c0_18, %c0_19], %21 {strides = array<i32>} : memref<1x64xf32, #tpu.memory_space<vmem>>, vector<1x64xf32>,
    } else {
    }
    %c0 = arith.constant 0 : index
    %c0_1 = arith.constant 0 : index
    %c0_2 = arith.constant 0 : index
    %3 = vector.load %arg2[%c0, %c0_1, %c0_2] : memref<1x256x64xf32, #tpu.memory_space<vmem>>, vector<1x256x64xf32>
    %4 = vector.shape_cast %3 : vector<1x256x64xf32> to vector<256x64xf32>
    %c0_3 = arith.constant 0 : index
    %c0_4 = arith.constant 0 : index
    %5 = vector.load %arg8[%c0_3, %c0_4] : memref<1x64xf32, #tpu.memory_space<vmem>>, vector<1x64xf32>
    %cst = arith.constant dense<0.000000e+00> : vector<64xf32>
    %6 = vector.multi_reduction <add>, %4, %cst [0] : vector<256x64xf32> to vector<64xf32>
    %7 = vector.shape_cast %6 : vector<64xf32> to vector<1x64xf32>
    %8 = arith.addf %5, %7 : vector<1x64xf32>
    %c0_5 = arith.constant 0 : index
    %c0_6 = arith.constant 0 : index
    %9 = vector.load %arg8[%c0_5, %c0_6] : memref<1x64xf32, #tpu.memory_space<vmem>>, vector<1x64xf32>
    tpu.vector_store %arg8[%c0_5, %c0_6], %8 {strides = array<i32>} : memref<1x64xf32, #tpu.memory_space<vmem>>, vector<1x64xf32>,
    %c0_7 = arith.constant 0 : index
    %c0_8 = arith.constant 0 : index
    %10 = vector.load %arg9[%c0_7, %c0_8] : memref<1x64xf32, #tpu.memory_space<vmem>>, vector<1x64xf32>
    %11 = arith.mulf %4, %4 : vector<256x64xf32>
    %cst_9 = arith.constant dense<0.000000e+00> : vector<64xf32>
    %12 = vector.multi_reduction <add>, %11, %cst_9 [0] : vector<256x64xf32> to vector<64xf32>
    %13 = vector.shape_cast %12 : vector<64xf32> to vector<1x64xf32>
    %14 = arith.addf %10, %13 : vector<1x64xf32>
    %c0_10 = arith.constant 0 : index
    %c0_11 = arith.constant 0 : index
    %15 = vector.load %arg9[%c0_10, %c0_11] : memref<1x64xf32, #tpu.memory_space<vmem>>, vector<1x64xf32>
    tpu.vector_store %arg9[%c0_10, %c0_11], %14 {strides = array<i32>} : memref<1x64xf32, #tpu.memory_space<vmem>>, vector<1x64xf32>,
    %c0_i32_12 = arith.constant 0 : i32
    %16 = arith.cmpi eq, %arg1, %c0_i32_12 : i32
    %17 = arith.extui %16 : i1 to i32
    %c0_i32_13 = arith.constant 0 : i32
    %18 = arith.cmpi ne, %17, %c0_i32_13 : i32
    scf.if %18 {
      %c0_14 = arith.constant 0 : index
      %c0_15 = arith.constant 0 : index
      %19 = vector.load %arg3[%c0_14, %c0_15] : memref<64x64xf32, #tpu.memory_space<vmem>>, vector<64x64xf32>
      %c0_16 = arith.constant 0 : index
      %c0_17 = arith.constant 0 : index
      %20 = vector.load %arg8[%c0_16, %c0_17] : memref<1x64xf32, #tpu.memory_space<vmem>>, vector<1x64xf32>
      %cst_18 = arith.constant dense<0.000000e+00> : vector<1x64xf32>
      %21 = tpu.matmul %20, %19, %cst_18 {dimension_numbers = #tpu.dot_dimension_numbers<[1], [0], [0], [1], [0, 0, 1, 1], [], []>} : vector<1x64xf32>, vector<64x64xf32>, vector<1x64xf32> -> vector<1x64xf32>
      %c0_19 = arith.constant 0 : index
      %c0_20 = arith.constant 0 : index
      %22 = vector.load %arg9[%c0_19, %c0_20] : memref<1x64xf32, #tpu.memory_space<vmem>>, vector<1x64xf32>
      %cst_21 = arith.constant dense<0.000000e+00> : vector<1x64xf32>
      %23 = tpu.matmul %22, %19, %cst_21 {dimension_numbers = #tpu.dot_dimension_numbers<[1], [0], [0], [1], [0, 0, 1, 1], [], []>} : vector<1x64xf32>, vector<64x64xf32>, vector<1x64xf32> -> vector<1x64xf32>
      %24 = arith.mulf %21, %21 : vector<1x64xf32>
      %25 = arith.subf %23, %24 : vector<1x64xf32>
      %cst_22 = arith.constant 0.000000e+00 : f32
      %26 = vector.broadcast %cst_22 : f32 to vector<1x64xf32>
      %27 = arith.maximumf %25, %26 : vector<1x64xf32>
      %cst_23 = arith.constant 9.99999974E-6 : f32
      %28 = vector.broadcast %cst_23 : f32 to vector<1x64xf32>
      %29 = arith.addf %27, %28 : vector<1x64xf32>
      %30 = math.rsqrt %29 : vector<1x64xf32>
      %c0_24 = arith.constant 0 : index
      %c0_25 = arith.constant 0 : index
      %31 = vector.load %arg4[%c0_24, %c0_25] : memref<1x64xf32, #tpu.memory_space<vmem>>, vector<1x64xf32>
      %32 = arith.mulf %30, %31 : vector<1x64xf32>
      %c0_26 = arith.constant 0 : index
      %c0_27 = arith.constant 0 : index
      %c0_28 = arith.constant 0 : index
      %33 = vector.load %arg6[%c0_26, %c0_27, %c0_28] : memref<1x1x64xf32, #tpu.memory_space<vmem>>, vector<1x1x64xf32>
      %34 = vector.shape_cast %33 : vector<1x1x64xf32> to vector<1x64xf32>
      %35 = vector.shape_cast %32 : vector<1x64xf32> to vector<1x1x64xf32>
      tpu.vector_store %arg6[%c0_26, %c0_27, %c0_28], %35 {strides = array<i32>} : memref<1x1x64xf32, #tpu.memory_space<vmem>>, vector<1x1x64xf32>,
      %c0_29 = arith.constant 0 : index
      %c0_30 = arith.constant 0 : index
      %36 = vector.load %arg5[%c0_29, %c0_30] : memref<1x64xf32, #tpu.memory_space<vmem>>, vector<1x64xf32>
      %37 = arith.mulf %21, %32 : vector<1x64xf32>
      %38 = arith.subf %36, %37 : vector<1x64xf32>
      %c0_31 = arith.constant 0 : index
      %c0_32 = arith.constant 0 : index
      %c0_33 = arith.constant 0 : index
      %39 = vector.load %arg7[%c0_31, %c0_32, %c0_33] : memref<1x1x64xf32, #tpu.memory_space<vmem>>, vector<1x1x64xf32>
      %40 = vector.shape_cast %39 : vector<1x1x64xf32> to vector<1x64xf32>
      %41 = vector.shape_cast %38 : vector<1x64xf32> to vector<1x1x64xf32>
      tpu.vector_store %arg7[%c0_31, %c0_32, %c0_33], %41 {strides = array<i32>} : memref<1x1x64xf32, #tpu.memory_space<vmem>>, vector<1x1x64xf32>,
    } else {
    }
    return
  }
  func.func @transform_0(%arg0: i32, %arg1: i32) -> (i32, i32, i32) {
    %c0_i32 = arith.constant 0 : i32
    %c0_i32_0 = arith.constant 0 : i32
    return %arg0, %arg1, %c0_i32 : i32, i32, i32
  }
  func.func @transform_1(%arg0: i32, %arg1: i32) -> (i32, i32) {
    %c0_i32 = arith.constant 0 : i32
    %c0_i32_0 = arith.constant 0 : i32
    %c0_i32_1 = arith.constant 0 : i32
    return %c0_i32, %c0_i32_0 : i32, i32
  }
  func.func @transform_2(%arg0: i32, %arg1: i32) -> (i32, i32) {
    %c0_i32 = arith.constant 0 : i32
    %c0_i32_0 = arith.constant 0 : i32
    %c0_i32_1 = arith.constant 0 : i32
    return %c0_i32, %c0_i32_0 : i32, i32
  }
  func.func @transform_3(%arg0: i32, %arg1: i32) -> (i32, i32) {
    %c0_i32 = arith.constant 0 : i32
    %c0_i32_0 = arith.constant 0 : i32
    %c0_i32_1 = arith.constant 0 : i32
    return %c0_i32, %c0_i32_0 : i32, i32
  }
  func.func @transform_4(%arg0: i32, %arg1: i32) -> (i32, i32, i32) {
    %c0_i32 = arith.constant 0 : i32
    %c0_i32_0 = arith.constant 0 : i32
    %c0_i32_1 = arith.constant 0 : i32
    return %arg0, %c0_i32, %c0_i32_0 : i32, i32, i32
  }
  func.func @transform_5(%arg0: i32, %arg1: i32) -> (i32, i32, i32) {
    %c0_i32 = arith.constant 0 : i32
    %c0_i32_0 = arith.constant 0 : i32
    %c0_i32_1 = arith.constant 0 : i32
    return %arg0, %c0_i32, %c0_i32_0 : i32, i32, i32
  }
}

</mosaic_0001>

<bundles_post_ra>
// kernel: tpu_custom_call.1
= control target key start
LH: loop header
LB: loop body
LE: loop exit
PB: predicated region body
PF: predicated region fallthrough
CT: control target
= control target key end

     0   :  { %11 = vsyncpa [#allocation5], 0  ;;  %s1350_s0 = inlined_call_operand.vmem [shape: f32[2,256,64], index: 0, kind: input, shape index: {}]   ;;  %s1351_s1 = inlined_call_operand.vmem [shape: f32[64,64], index: 1, kind: input, shape index: {}]   ;;  %s1352_s2 = inlined_call_operand.vmem [shape: f32[1,64], index: 2, kind: input, shape index: {}]   ;;  %s1353_s3 = inlined_call_operand.vmem [shape: f32[1,64], index: 3, kind: input, shape index: {}]   ;;  %s1354_s4 = inlined_call_operand.hbm [shape: f32[2,1,64], index: 4, kind: output, shape index: {0}]   ;;  %s1355_s5 = inlined_call_operand.hbm [shape: f32[2,1,64], index: 5, kind: output, shape index: {1}]  }
   0x1   :  { %13 = vsyncpa [#allocation5 + $0x1], 0 }
   0x2   :  { %14 = vsyncpa [#allocation7], 0 }
   0x3   :  { %16 = vsyncpa [#allocation7 + $0x1], 0  ;;  %s1051_s18 = smov 0   ;;  %s1053_s19 = smov 0  }
   0x4   :  { %s1055_s20 = smov 0   ;;  %s1057_s21 = smov 0  }
   0x5   :  { %s1059_s22 = smov 0   ;;  %s1061_s23 = smov 0  }
   0x6 LB: > { %s775_s24 = sadd.s32 4294967295, %s1015_s23   ;;  %s776_s25 = sadd.s32 4294967294, %s1015_s23   ;;  %s1015_s23 = sphi %s1061_s23, %s22_s23   ;;  %s1011_s22 = sphi %s1059_s22, %s1364_s22   ;;  %s1007_s21 = sphi %s1057_s21, %s1363_s21   ;;  %s1003_s20 = sphi %s1055_s20, %s1362_s20   ;;  %s999_s19 = sphi %s1053_s19, %s1361_s19   ;;  %s995_s18 = sphi %s1051_s18, %s1360_s18  }
   0x7   : > { %s34_s26 = sadd.s32 1, %s1011_s22  ;;  %s132_s27 = sadd.s32 1, %s1003_s20 }
   0x8   : > { %p36_p0 = scmp.ge.s32.totalorder %s34_s26, 2  ;;  %p142_p1 = scmp.ne.s32.totalorder %s1003_s20, %s999_s19 }
   0x9   : > { %p143_p2 = scmp.eq.s32.totalorder %s775_s24, 1  ;;  %p148_p3 = scmp.ne.s32.totalorder %s999_s19, %s995_s18 }
   0xa   : > { %s1366_s26 = smov (%p36_p0, %s34_s26), 0  ;;  %p149_p5 = scmp.eq.s32.totalorder %s776_s25, 1 }
   0xb   : > { %p1091_p4 = por %p143_p2, %p142_p1  ;;  %s129_s29 = ssub.s32 %s1011_s22, %s1366_s26 }
   0xc   : > { %p779_p6 = scmp.ge.s32.totalorder %s1015_s23, 1  ;;  %p130_p7 = scmp.eq.s32.totalorder %s129_s29, 0 }
   0xd   : > { %p1098_p8 = por %p149_p5, %p148_p3  ;;  %p215_p9 = scmp.lt.s32.totalorder %s1015_s23, 3 }
   0xe   : > { %s1104_s6 = scalar_select %p130_p7, %s1003_s20, %s132_s27  }
   0xf   : > { %p216_p10 = pnand %p779_p6, %p215_p9 }
  0x10   : > { %p251_p11 = scmp.lt.s32.totalorder (!%p216_p10), %s1007_s21, 1  ;;  %s1260_s13 = sand.u32 (!%p216_p10), 1, %s999_s19  }
  0x11   : > { %219 = sbr.rel (%p216_p10) target bundleno = 370 (0x172), region = 36  ;;  %s784_s16 = sshll.u32 (!%p216_p10), %s1007_s21, 4 }
  0x12   : > { %s243_s17 = scalar_lea.vmem (!%p216_p10), [#allocation4], %s1260_s13  ;;  %s1272_s29 = scalar_lea.hbm (!%p216_p10), %s1354_s4, %s784_s16 }
  0x13   : > { %s665_s24 = sshll.u32 (!%p216_p10), %s243_s17, 4  ;;  %s1356_s9 = scalar_lea.vmem (!%p216_p10), [#allocation6], %s1260_s13  ;;  %s1274_s24 = int_to_ptr.vmem [resolvable:$true] %s665_s24 }
  0x14   : > { %s1282_s10 = sshll.u32 (!%p216_p10), %s1356_s9, 4  ;;  %s909_s12 = scalar_lea.vmem (!%p216_p10), %s1274_s24, 16  ;;  %s679_s10 = int_to_ptr.vmem [resolvable:$true] %s1282_s10 }
  0x15   : > { %p910_p12 = scmp.ne.s32.totalorder (!%p216_p10), %s1274_s24, %s909_s12 }
  0x16   : > { %v487_v0 = vld [vmem:[%s1351_s1 + $0x38] sm:$0xff]  ;;  %v1017_v1 = vmov 0.0   ;;  %v486_v2 = vld [vmem:[%s1351_s1 + $0x30] sm:$0xff]  ;;  %vm264_vm0 = vcmask 516096   ;;  %s252_s11 = scalar_select %p251_p11, %s1007_s21, 1  ;;  %v485_v3 = vld [vmem:[%s1351_s1 + $0x28] sm:$0xff] }
  0x17   : > { %807 = vmatprep.subr.mxu0 %v1017_v1  ;;  %826 = vmatprep.subr.mxu1 %v1017_v1  ;;  %265 = vst.msk [vmem:[#allocation2] sm:$0x1] %vm264_vm0, %v1017_v1  ;;  %266 = vst.msk [vmem:[#allocation3] sm:$0x1] %vm264_vm0, %v1017_v1  ;;  %vm300_vm1 = vcmask 523264   ;;  %v484_v4 = vld [vmem:[%s1351_s1 + $0x20] sm:$0xff]  ;;  %p911_p13 = pnand %p910_p12, %p1091_p4 }
  0x18   : > { %808 = vmatpush3.msra.mxu0 %v487_v0  ;;  %827 = vmatpush3.msra.mxu1 %v487_v0  ;;  %s788_s14 = sshll.u32 %s252_s11, 8  ;;  %v483_v8 = vld [vmem:[%s1351_s1 + $0x18] sm:$0xff]  ;;  %v482_v15 = vld [vmem:[%s1351_s1 + $0x10] sm:$0xff]  ;;  %v481_v19 = vld [vmem:[%s1351_s1 + $0x8] sm:$0xff]  ;;  %vm1018_vm2 = vmmov 0   ;;  %s649_s11 = scalar_lea.sflag [#allocation5], %s1260_s13 }
  0x19   : > { %809 = vmatprep.subr.mxu0 %v1017_v1  ;;  %828 = vmatprep.subr.mxu1 %v1017_v1  ;;  %s1133_s25 = scalar_lea.vmem %s1350_s0, %s788_s14  ;;  %v480_v23 = vld [vmem:[%s1351_s1] sm:$0xff]  ;;  %p912_p0 = pneg %p911_p13 }
  0x1a   : > { %810 = vmatpush3.msra.mxu0 %v486_v2  ;;  %829 = vmatpush3.msra.mxu1 %v486_v2  ;;  %v267_v5 = vld [vmem:[%s1133_s25] sm:$0xff]  ;;  %v268_v6 = vld [vmem:[%s1133_s25 + $0x8] sm:$0xff]  ;;  %v269_v7 = vld [vmem:[%s1133_s25 + $0x10] sm:$0xff]  ;;  %s1019_s14 = smov [#allocation4]  }
  0x1b   : > { %811 = vmatprep.subr.mxu0 %v1017_v1  ;;  %830 = vmatprep.subr.mxu1 %v1017_v1  ;;  %v270_v9 = vld [vmem:[%s1133_s25 + $0x18] sm:$0xff]  ;;  %v301_v10 = vsel %vm300_vm1, %v267_v5, 0.0  ;;  %v302_v11 = vsel %vm300_vm1, %v268_v6, 0.0  ;;  %v304_v12 = vsel %vm300_vm1, %v269_v7, 0.0  ;;  %v271_v13 = vld [vmem:[%s1133_s25 + $0x20] sm:$0xff]  ;;  %v272_v17 = vld [vmem:[%s1133_s25 + $0x28] sm:$0xff]  ;;  %v374_v38 = vmul.f32 %v267_v5, %v267_v5 }
  0x1c   : > { %812 = vmatpush3.msra.mxu0 %v485_v3  ;;  %831 = vmatpush3.msra.mxu1 %v485_v3  ;;  %v303_v14 = vadd.f32 %v302_v11, %v301_v10  ;;  %v306_v16 = vsel %vm300_vm1, %v270_v9, 0.0  ;;  %v308_v20 = vsel %vm300_vm1, %v271_v13, 0.0  ;;  %v273_v21 = vld [vmem:[%s1133_s25 + $0x30] sm:$0xff]  ;;  %v310_v24 = vsel %vm300_vm1, %v272_v17, 0.0  ;;  %v274_v25 = vld [vmem:[%s1133_s25 + $0x38] sm:$0xff]  ;;  %v275_v28 = vld [vmem:[%s1133_s25 + $0x40] sm:$0xff] }
  0x1d   : > { %813 = vmatprep.subr.mxu0 %v1017_v1  ;;  %832 = vmatprep.subr.mxu1 %v1017_v1  ;;  %v312_v27 = vsel %vm300_vm1, %v273_v21, 0.0  ;;  %v314_v30 = vsel %vm300_vm1, %v274_v25, 0.0  ;;  %v276_v31 = vld [vmem:[%s1133_s25 + $0x48] sm:$0xff]  ;;  %v316_v33 = vsel %vm300_vm1, %v275_v28, 0.0  ;;  %v277_v34 = vld [vmem:[%s1133_s25 + $0x50] sm:$0xff]  ;;  %v278_v36 = vld [vmem:[%s1133_s25 + $0x58] sm:$0xff]  ;;  %v375_v39 = vmul.f32 %v268_v6, %v268_v6 }
  0x1e   : > { %814 = vmatpush3.msra.mxu0 %v484_v4  ;;  %833 = vmatpush3.msra.mxu1 %v484_v4  ;;  %v305_v18 = vadd.f32 %v304_v12, %v303_v14  ;;  %v318_v37 = vsel %vm300_vm1, %v276_v31, 0.0  ;;  %v376_v40 = vmul.f32 %v269_v7, %v269_v7  ;;  %v320_v42 = vsel %vm300_vm1, %v277_v34, 0.0  ;;  %v279_v44 = vld [vmem:[%s1133_s25 + $0x60] sm:$0xff]  ;;  %v280_v51 = vld [vmem:[%s1133_s25 + $0x68] sm:$0xff]  ;;  %v281_v57 = vld [vmem:[%s1133_s25 + $0x70] sm:$0xff]  ;;  %s913_s15 = sshll.u32 %s1019_s14, 4  ;;  %s914_s15 = int_to_ptr.vmem [resolvable:$false] %s913_s15 }
  0x1f   : > { %815 = vmatprep.subr.mxu0 %v1017_v1  ;;  %834 = vmatprep.subr.mxu1 %v1017_v1  ;;  %v377_v43 = vmul.f32 %v270_v9, %v270_v9  ;;  %v322_v46 = vsel %vm300_vm1, %v278_v36, 0.0  ;;  %v378_v47 = vmul.f32 %v271_v13, %v271_v13  ;;  %v406_v48 = vsel %vm300_vm1, %v374_v38, 0.0  ;;  %v282_v63 = vld [vmem:[%s1133_s25 + $0x78] sm:$0xff]  ;;  %v283_v5 = vld [vmem:[%s1133_s25 + $0x80] sm:$0xff]  ;;  %v284_v11 = vld [vmem:[%s1133_s25 + $0x88] sm:$0xff]  ;;  %p916_p1 = scmp.lt.s32.totalorder %s1274_s24, %s914_s15 }
  0x20   : > { %816 = vmatpush3.msra.mxu0 %v483_v8  ;;  %835 = vmatpush3.msra.mxu1 %v483_v8  ;;  %v307_v22 = vadd.f32 %v306_v16, %v305_v18  ;;  %v407_v49 = vsel %vm300_vm1, %v375_v39, 0.0  ;;  %v409_v50 = vsel %vm300_vm1, %v376_v40, 0.0  ;;  %v324_v54 = vsel %vm300_vm1, %v279_v44, 0.0 }
  0x21   : > { %817 = vmatprep.subr.mxu0 %v1017_v1  ;;  %836 = vmatprep.subr.mxu1 %v1017_v1  ;;  %v408_v53 = vadd.f32 %v407_v49, %v406_v48  ;;  %v379_v55 = vmul.f32 %v272_v17, %v272_v17  ;;  %v411_v56 = vsel %vm300_vm1, %v377_v43, 0.0  ;;  %v326_v60 = vsel %vm300_vm1, %v280_v51, 0.0  ;;  %v285_v17 = vld [vmem:[%s1133_s25 + $0x90] sm:$0xff] }
  0x22   : > { %818 = vmatpush3.msra.mxu0 %v482_v15  ;;  %837 = vmatpush3.msra.mxu1 %v482_v15  ;;  %v309_v26 = vadd.f32 %v308_v20, %v307_v22  ;;  %v380_v61 = vmul.f32 %v273_v21, %v273_v21  ;;  %v413_v62 = vsel %vm300_vm1, %v378_v47, 0.0  ;;  %v328_v2 = vsel %vm300_vm1, %v281_v57, 0.0  ;;  %v290_v47 = vld [vmem:[%s1133_s25 + $0xb8] sm:$0xff] }
  0x23   : > { %819 = vmatprep.subr.mxu0 %v1017_v1  ;;  %838 = vmatprep.subr.mxu1 %v1017_v1  ;;  %v410_v59 = vadd.f32 %v409_v50, %v408_v53  ;;  %v381_v3 = vmul.f32 %v274_v25, %v274_v25  ;;  %v415_v4 = vsel %vm300_vm1, %v379_v55, 0.0  ;;  %v330_v8 = vsel %vm300_vm1, %v282_v63, 0.0  ;;  %v291_v53 = vld [vmem:[%s1133_s25 + $0xc0] sm:$0xff] }
  0x24   : > { %820 = vmatpush3.msra.mxu0 %v481_v19  ;;  %823 = vmatprep.mubr.msk.f32.mxu0 %vm1018_vm2, %v1017_v1  ;;  %v311_v29 = vadd.f32 %v310_v24, %v309_v26  ;;  %v382_v9 = vmul.f32 %v275_v28, %v275_v28  ;;  %v417_v10 = vsel %vm300_vm1, %v380_v61, 0.0  ;;  %v332_v14 = vsel %vm300_vm1, %v283_v5, 0.0 }
  0x25   : > { %821 = vmatprep.subr.mxu0 %v1017_v1  ;;  %839 = vmatpush3.msra.mxu1 %v481_v19  ;;  %v383_v15 = vmul.f32 %v276_v31, %v276_v31  ;;  %v419_v16 = vsel %vm300_vm1, %v381_v3, 0.0  ;;  %v334_v20 = vsel %vm300_vm1, %v284_v11, 0.0  ;;  %v384_v21 = vmul.f32 %v277_v34, %v277_v34 }
  0x26   : > { %822 = vmatpush3.msra.mxu0 %v480_v23  ;;  %840 = vmatprep.subr.mxu1 %v1017_v1  ;;  %v313_v32 = vadd.f32 %v312_v27, %v311_v29  ;;  %v421_v22 = vsel %vm300_vm1, %v382_v9, 0.0  ;;  %v336_v26 = vsel %vm300_vm1, %v285_v17, 0.0  ;;  %v385_v27 = vmul.f32 %v278_v36, %v278_v36  ;;  %v287_v29 = vld [vmem:[%s1133_s25 + $0xa0] sm:$0xff] }
  0x27   : > { %841 = vmatpush3.msra.mxu1 %v480_v23  ;;  %842 = vmatprep.mubr.msk.f32.mxu1 %vm1018_vm2, %v1017_v1  ;;  %v412_v1 = vadd.f32 %v411_v56, %v410_v59  ;;  %v286_v23 = vld [vmem:[%s1133_s25 + $0x98] sm:$0xff]  ;;  %v423_v28 = vsel %vm300_vm1, %v383_v15, 0.0  ;;  %v425_v34 = vsel %vm300_vm1, %v384_v21, 0.0  ;;  %v340_v39 = vsel %vm300_vm1, %v287_v29, 0.0  ;;  %v292_v59 = vld [vmem:[%s1133_s25 + $0xc8] sm:$0xff] }
  0x28   : > { %v315_v35 = vadd.f32 %v314_v30, %v313_v32  ;;  %v338_v32 = vsel %vm300_vm1, %v286_v23, 0.0  ;;  %v387_v40 = vmul.f32 %v280_v51, %v280_v51  ;;  %v427_v36 = vsel %vm300_vm1, %v385_v27, 0.0 }
  0x29   : > { %v414_v7 = vadd.f32 %v413_v62, %v412_v1  ;;  %v346_v56 = vsel %vm300_vm1, %v290_v47, 0.0  ;;  %v348_v62 = vsel %vm300_vm1, %v291_v53, 0.0  ;;  %v293_v1 = vld [vmem:[%s1133_s25 + $0xd0] sm:$0xff] }
  0x2a   : > { %v317_v41 = vadd.f32 %v316_v33, %v315_v35  ;;  %v386_v33 = vmul.f32 %v279_v44, %v279_v44  ;;  %v288_v35 = vld [vmem:[%s1133_s25 + $0xa8] sm:$0xff]  ;;  %v431_v51 = vsel %vm300_vm1, %v387_v40, 0.0 }
  0x2b   : > { %v416_v13 = vadd.f32 %v415_v4, %v414_v7  ;;  %v350_v4 = vsel %vm300_vm1, %v292_v59, 0.0  ;;  %v294_v7 = vld [vmem:[%s1133_s25 + $0xd8] sm:$0xff] }
  0x2c   : > { %v319_v45 = vadd.f32 %v318_v37, %v317_v41  ;;  %v289_v41 = vld [vmem:[%s1133_s25 + $0xb0] sm:$0xff]  ;;  %v429_v44 = vsel %vm300_vm1, %v386_v33, 0.0 }
  0x2d   : > { %v418_v19 = vadd.f32 %v417_v10, %v416_v13  ;;  %v344_v50 = vsel %vm300_vm1, %v289_v41, 0.0  ;;  %v352_v10 = vsel %vm300_vm1, %v293_v1, 0.0  ;;  %v295_v13 = vld [vmem:[%s1133_s25 + $0xe0] sm:$0xff] }
  0x2e   : > { %v321_v52 = vadd.f32 %v320_v42, %v319_v45  ;;  %v342_v45 = vsel %vm300_vm1, %v288_v35, 0.0 }
  0x2f   : > { %v420_v25 = vadd.f32 %v419_v16, %v418_v19  ;;  %v354_v16 = vsel %vm300_vm1, %v294_v7, 0.0  ;;  %v296_v19 = vld [vmem:[%s1133_s25 + $0xe8] sm:$0xff] }
  0x30   : > { %v323_v58 = vadd.f32 %v322_v46, %v321_v52  ;;  %v388_v46 = vmul.f32 %v281_v57, %v281_v57  ;;  %v389_v52 = vmul.f32 %v282_v63, %v282_v63 }
  0x31   : > { %v422_v31 = vadd.f32 %v421_v22, %v420_v25  ;;  %v356_v22 = vsel %vm300_vm1, %v295_v13, 0.0 }
  0x32   : > { %v325_v0 = vadd.f32 %v324_v54, %v323_v58  ;;  %v390_v58 = vmul.f32 %v283_v5, %v283_v5  ;;  %v433_v57 = vsel %vm300_vm1, %v388_v46, 0.0  ;;  %v435_v63 = vsel %vm300_vm1, %v389_v52, 0.0 }
  0x33   : > { %v424_v38 = vadd.f32 %v423_v28, %v422_v31  ;;  %v358_v28 = vsel %vm300_vm1, %v296_v19, 0.0 }
  0x34   : > { %v327_v6 = vadd.f32 %v326_v60, %v325_v0  ;;  %v391_v0 = vmul.f32 %v284_v11, %v284_v11  ;;  %v437_v5 = vsel %vm300_vm1, %v390_v58, 0.0 }
  0x35   : > { %v426_v43 = vadd.f32 %v425_v34, %v424_v38 }
  0x36   : > { %v329_v12 = vadd.f32 %v328_v2, %v327_v6  ;;  %v392_v6 = vmul.f32 %v285_v17, %v285_v17  ;;  %v439_v11 = vsel %vm300_vm1, %v391_v0, 0.0 }
  0x37   : > { %v428_v49 = vadd.f32 %v427_v36, %v426_v43  ;;  %v398_v36 = vmul.f32 %v291_v53, %v291_v53  ;;  %v402_v53 = vmul.f32 %v295_v13, %v295_v13 }
  0x38   : > { %v331_v18 = vadd.f32 %v330_v8, %v329_v12  ;;  %v393_v12 = vmul.f32 %v286_v23, %v286_v23  ;;  %v441_v17 = vsel %vm300_vm1, %v392_v6, 0.0  ;;  %v297_v23 = vld [vmem:[%s1133_s25 + $0xf0] sm:$0xff] }
  0x39   : > { %v430_v55 = vadd.f32 %v429_v44, %v428_v49  ;;  %v360_v34 = vsel %vm300_vm1, %v297_v23, 0.0  ;;  %v400_v49 = vmul.f32 %v293_v1, %v293_v1  ;;  %v461_v1 = vsel %vm300_vm1, %v402_v53, 0.0 }
  0x3a   : > { %v333_v24 = vadd.f32 %v332_v14, %v331_v18  ;;  %v394_v18 = vmul.f32 %v287_v29, %v287_v29  ;;  %v443_v25 = vsel %vm300_vm1, %v393_v12, 0.0 }
  0x3b   : > { %v432_v61 = vadd.f32 %v431_v51, %v430_v55  ;;  %v401_v51 = vmul.f32 %v294_v7, %v294_v7  ;;  %v457_v58 = vsel %vm300_vm1, %v400_v49, 0.0 }
  0x3c   : > { %v335_v30 = vadd.f32 %v334_v20, %v333_v24  ;;  %v395_v24 = vmul.f32 %v288_v35, %v288_v35  ;;  %v445_v31 = vsel %vm300_vm1, %v394_v18, 0.0 }
  0x3d   : > { %v434_v3 = vadd.f32 %v433_v57, %v432_v61  ;;  %v459_v61 = vsel %vm300_vm1, %v401_v51, 0.0 }
  0x3e   : > { %v337_v37 = vadd.f32 %v336_v26, %v335_v30  ;;  %v396_v30 = vmul.f32 %v289_v41, %v289_v41  ;;  %v447_v38 = vsel %vm300_vm1, %v395_v24, 0.0  ;;  %v399_v41 = vmul.f32 %v292_v59, %v292_v59 }
  0x3f   : > { %v436_v9 = vadd.f32 %v435_v63, %v434_v3  ;;  %v403_v59 = vmul.f32 %v296_v19, %v296_v19  ;;  %v404_v63 = vmul.f32 %v297_v23, %v297_v23 }
  0x40   : > { %v339_v42 = vadd.f32 %v338_v32, %v337_v37  ;;  %v298_v32 = vld [vmem:[%s1133_s25 + $0xf8] sm:$0xff]  ;;  %v397_v37 = vmul.f32 %v290_v47, %v290_v47  ;;  %s915_s25 = scalar_lea.vmem %s914_s15, 32 }
  0x41   : > { %v438_v15 = vadd.f32 %v437_v5, %v436_v9  ;;  %v362_v40 = vsel %vm300_vm1, %v298_v32, 0.0  ;;  %v405_v6 = vmul.f32 %v298_v32, %v298_v32  ;;  %v463_v5 = vsel %vm300_vm1, %v403_v59, 0.0  ;;  %p917_p2 = scmp.lt.s32.totalorder %s915_s25, %s909_s12 }
  0x42   : > { %v341_v48 = vadd.f32 %v340_v39, %v339_v42  ;;  %v449_v42 = vsel %vm300_vm1, %v396_v30, 0.0  ;;  %v451_v46 = vsel %vm300_vm1, %v397_v37, 0.0  ;;  %v465_v9 = vsel %vm300_vm1, %v404_v63, 0.0 }
  0x43   : > { %v440_v21 = vadd.f32 %v439_v11, %v438_v15  ;;  %v467_v11 = vsel %vm300_vm1, %v405_v6, 0.0  ;;  %p918_p3 = por %p917_p2, %p916_p1 }
  0x44   : > { %v343_v54 = vadd.f32 %v342_v45, %v341_v48 }
  0x45   : > { %v442_v27 = vadd.f32 %v441_v17, %v440_v21  ;;  %v373_v21 = vld [vmem:[#allocation3] sm:$0x1]  ;;  %p919_p5 = pnand %p918_p3, %p912_p0 }
  0x46   : > { %v345_v60 = vadd.f32 %v344_v50, %v343_v54  ;;  %v453_v50 = vsel %vm300_vm1, %v398_v36, 0.0  ;;  %v455_v54 = vsel %vm300_vm1, %v399_v41, 0.0 }
  0x47   : > { %v444_v33 = vadd.f32 %v443_v25, %v442_v27 }
  0x48   : > { %v347_v2 = vadd.f32 %v346_v56, %v345_v60 }
  0x49   : > { %v446_v35 = vadd.f32 %v445_v31, %v444_v33  ;;  %v641_v33 = vld [vmem:[%s1352_s2] sm:$0x1] }
  0x4a   : > { %v349_v8 = vadd.f32 %v348_v62, %v347_v2 }
  0x4b   : > { %v448_v45 = vadd.f32 %v447_v38, %v446_v35  ;;  %v644_v38 = vld [vmem:[%s1353_s3] sm:$0x1] }
  0x4c   : > { %v351_v14 = vadd.f32 %v350_v4, %v349_v8  ;;  %v299_v4 = vld [vmem:[#allocation2] sm:$0x1] }
  0x4d   : > { %v450_v48 = vadd.f32 %v449_v42, %v448_v45 }
  0x4e   : > { %v353_v20 = vadd.f32 %v352_v10, %v351_v14 }
  0x4f   : > { %v452_v52 = vadd.f32 %v451_v46, %v450_v48 }
  0x50   : > { %v355_v26 = vadd.f32 %v354_v16, %v353_v20 }
  0x51   : > { %v454_v56 = vadd.f32 %v453_v50, %v452_v52 }
  0x52   : > { %v357_v29 = vadd.f32 %v356_v22, %v355_v26 }
  0x53   : > { %v456_v60 = vadd.f32 %v455_v54, %v454_v56 }
  0x54   : > { %v359_v39 = vadd.f32 %v358_v28, %v357_v29 }
  0x55   : > { %v458_v0 = vadd.f32 %v457_v58, %v456_v60 }
  0x56   : > { %v361_v43 = vadd.f32 %v360_v34, %v359_v39 }
  0x57   : > { %v460_v3 = vadd.f32 %v459_v61, %v458_v0 }
  0x58   : > { %v363_v44 = vadd.f32 %v362_v40, %v361_v43 }
  0x59   : > { %v462_v8 = vadd.f32 %v461_v1, %v460_v3 }
  0x5a   : > { %v364_v47 = vrot.slane %v363_v44, 4 }
  0x5b   : > { %v464_v12 = vadd.f32 %v463_v5, %v462_v8 }
  0x5c   : > { %v365_v55 = vadd.f32 %v364_v47, %v363_v44 }
  0x5d   : > { %v466_v13 = vadd.f32 %v465_v9, %v464_v12 }
  0x5e   : > { %v366_v57 = vrot.slane %v365_v55, 2 }
  0x5f   : > { %v468_v14 = vadd.f32 %v467_v11, %v466_v13 }
  0x60   : > { %v367_v62 = vadd.f32 %v366_v57, %v365_v55 }
  0x61   : > { %v469_v15 = vrot.slane %v468_v14, 4 }
  0x62   : > { %v368_v2 = vrot.slane %v367_v62, 1 }
  0x63   : > { %v470_v16 = vadd.f32 %v469_v15, %v468_v14 }
  0x64   : > { %v369_v7 = vadd.f32 %v368_v2, %v367_v62 }
  0x65   : > { %v471_v17 = vrot.slane %v470_v16, 2 }
  0x66   : > { %v370_v10 = vadd.f32 %v369_v7, %v299_v4 }
  0x67   : > { %v472_v19 = vadd.f32 %v471_v17, %v470_v16 }
  0x68   : > { %372 = vst.msk [vmem:[#allocation2] sm:$0x1] %vm264_vm0, %v370_v10 }
  0x69   : > { %v473_v20 = vrot.slane %v472_v19, 1 }
  0x6b   : > { %v474_v22 = vadd.f32 %v473_v20, %v472_v19 }
  0x6d   : > { %v475_v24 = vadd.f32 %v474_v22, %v373_v21 }
  0x6f   : > { %v488_v18 = vld [vmem:[#allocation2] sm:$0x1]  ;;  %476 = vst.msk [vmem:[#allocation3] sm:$0x1] %vm264_vm0, %v475_v24 }
  0x70   : > { %824 = vmatmul.mubr.msk.f32.vlgmr.msra.gmra.mxu0 %vm300_vm1, %v488_v18 }
  0x76   : > { %v562_v25 = vld [vmem:[#allocation3] sm:$0x1] }
  0x77   : > { %843 = vmatmul.mubr.msk.f32.vlgmr.msra.gmra.mxu1 %vm300_vm1, %v562_v25 }
 0x130   : > { %v558_v23 = vpop.f32.mrf.mxu0 }
 0x131   : > { %v636_v27 = vmul.f32 %v558_v23, %v558_v23 }
 0x132   : > { %v825_v26 = vpop.f32.mrf.mxu0 }
 0x137   : > { %v632_v28 = vpop.f32.mrf.mxu1 }
 0x138   : > { %v637_v30 = vsub.f32 %v632_v28, %v636_v27 }
 0x139   : > { %v844_v31 = vpop.f32.mrf.mxu1 }
 0x13a   : > { %v638_v32 = vmax.f32 %v637_v30, 0.0 }
 0x13c   : > { %v639_v29 = vadd.f32 1e-05, %v638_v32 }
 0x13e   : > { %907 = vrsqrt.f32 %v639_v29 }
 0x14b   : > { %v908_v34 = vpop.eup %907 }
 0x14c   : > { %v642_v37 = vmul.f32 %v908_v34, %v641_v33 }
 0x14e   : > { %643 = vst.msk [vmem:[%s243_s17] sm:$0x1] %vm264_vm0, %v642_v37  ;;  %v645_v39 = vmul.f32 %v642_v37, %v558_v23 }
 0x14f   : > { %922 = shalt.err (!%p919_p5)
}
 0x150   : > { %s923_s17 = scalar_lea.hbm %s1272_s29, 16  ;;  %s927_s8 = scalar_lea.hbm %s1354_s4, 32 }
 0x151   : > { %p924_p6 = scmp.ne.s32.totalorder %s1272_s29, %s923_s17  ;;  %p928_p10 = scmp.lt.s32.totalorder %s1272_s29, %s1354_s4 }
 0x152   : > { %p929_p11 = scmp.lt.s32.totalorder %s927_s8, %s923_s17 }
 0x153   : > { %p925_p7 = pnand %p924_p6, %p1091_p4 }
 0x154   : > { %p930_p12 = por %p929_p11, %p928_p10 }
 0x155   : > { %p926_p9 = pneg %p925_p7 }
 0x157   : > { %p931_p13 = pnand %p930_p12, %p926_p9 }
 0x159   : > { %934 = shalt.err (!%p931_p13)
}
 0x15a   : > { %845 = dma.vmem_to_hbm [thread:$0]  (%p1091_p4), %s1274_s24, 16, %s1272_s29, %s649_s11   ;;  %v646_v35 = vsub.f32 %v644_v38, %v645_v39 }
 0x15b   : > { %s676_s9 = scalar_lea.hbm %s1355_s5, %s784_s16  ;;  %s1359_s25 = scalar_lea.vmem [#allocation6], %s1260_s13 }
 0x15c   : > { %647 = vst.msk [vmem:[%s1359_s25] sm:$0x1] %vm264_vm0, %v646_v35  ;;  %s653_s17 = scalar_lea.sflag [#allocation7], %s1260_s13  ;;  %s935_s27 = scalar_lea.vmem %s679_s10, 16 }
 0x15d   : > { %p936_p0 = scmp.ne.s32.totalorder %s679_s10, %s935_s27  ;;  %s1020_s7 = smov [#allocation6]  }
 0x15e   : > { %s939_s8 = sshll.u32 %s1020_s7, 4  ;;  %s940_s8 = int_to_ptr.vmem [resolvable:$false] %s939_s8 }
 0x15f   : > { %p937_p1 = pnand %p936_p0, %p1091_p4  ;;  %s941_s24 = scalar_lea.vmem %s940_s8, 32 }
 0x160   : > { %p942_p3 = scmp.lt.s32.totalorder %s679_s10, %s940_s8  ;;  %p943_p5 = scmp.lt.s32.totalorder %s941_s24, %s935_s27 }
 0x161   : > { %p938_p2 = pneg %p937_p1 }
 0x162   : > { %p944_p6 = por %p943_p5, %p942_p3 }
 0x164   : > { %p945_p7 = pnand %p944_p6, %p938_p2 }
 0x166   : > { %948 = shalt.err (!%p945_p7)
}
 0x167   : > { %s949_s21 = scalar_lea.hbm %s676_s9, 16  ;;  %s953_s29 = scalar_lea.hbm %s1355_s5, 32 }
 0x168   : > { %p950_p9 = scmp.ne.s32.totalorder %s676_s9, %s949_s21  ;;  %p954_p12 = scmp.lt.s32.totalorder %s676_s9, %s1355_s5 }
 0x169   : > { %p955_p13 = scmp.lt.s32.totalorder %s953_s29, %s949_s21 }
 0x16a   : > { %p951_p10 = pnand %p950_p9, %p1091_p4 }
 0x16b   : > { %p956_p0 = por %p955_p13, %p954_p12 }
 0x16c   : > { %p952_p11 = pneg %p951_p10 }
 0x16e   : > { %p957_p1 = pnand %p956_p0, %p952_p11 }
 0x170   : > { %960 = shalt.err (!%p957_p1)
}
 0x171   : > { %846 = dma.vmem_to_hbm [thread:$0]  (%p1091_p4), %s679_s10, 16, %s676_s9, %s653_s17  }
 0x172 PF: > { %p856_p2 = scmp.ge.s32.totalorder %s1015_s23, 2  ;;  %s690_s12 = sand.u32 1, %s995_s18  }
 0x173   : > { %s691_s15 = scalar_lea.sflag [#allocation5], %s690_s12 }
 0x174   : > { %p850_p3 = pnand %p856_p2, %p1098_p8 }
 0x176   : > { %p851_p5 = pneg %p850_p3 }
 0x178   : > { %986 = dma.done.wait (%p851_p5), %s691_s15, 16  }
 0x179   : > { %988 = vsyncadd (%p851_p5), %s691_s15, 4294967280  ;;  %s699_s25 = scalar_lea.sflag [#allocation7], %s690_s12 }
 0x17a   : > { %990 = dma.done.wait (%p851_p5), %s699_s25, 16  }
 0x17b   : > { %992 = vsyncadd (%p851_p5), %s699_s25, 4294967280  ;;  %s22_s23 = sadd.s32 1, %s1015_s23   ;;  %s1360_s18 = smov %s999_s19 }
 0x17c   : > { %p19_p6 = scmp.ge.s32.totalorder %s22_s23, 4   ;;  %s1361_s19 = smov %s1003_s20 }
 0x17d   : > { %s1362_s20 = smov %s1104_s6  ;;  %s1363_s21 = smov %s1011_s22 }
 0x17e   : > { %s1364_s22 = smov %s1366_s26  ;;  %21 = sbr.rel (!%p19_p6) target bundleno = 6 (0x6), region = 96 }
 0x183   :  { %703 = vsyncpa [#allocation5], 1 }
 0x184   :  { %705 = vsyncpa [#allocation5 + $0x1], 1 }
 0x185   :  { %706 = vsyncpa [#allocation7], 1 }
 0x186   :  { %708 = vsyncpa [#allocation7 + $0x1], 1 }

</bundles_post_ra>
